<compile_context>
chip_gen: v5e
topology: v5e:2x2
jax: 0.10.0
libtpu: 0.0.40
codegen_flags: <defaults>
</compile_context>

<pallas_src>
import jax
import jax.numpy as jnp
from jax import lax
from jax.experimental import pallas as pl
from jax.experimental.pallas import tpu as pltpu

_LANES = 128


def _round_up(v, m):
    return ((v + m - 1) // m) * m


# ----------------------------------------------------------------------------- kernels
def _make_stats_kernel(tile_m, n_valid_rows, negative_slope):
    """Pass 1: conv (single im2col matmul) + bias + LeakyReLU + masked BN partials."""

    def kernel(p_ref, w_ref, b_ref, sum_ref, sq_ref):
        # p_ref: (TILE_M, K)   pre-built im2col patch rows (zero-padded tail rows)
        # w_ref: (K, Cp)       flattened weight, channel-padded to 128 lanes
        # b_ref: (1, Cp)       conv bias (f32)
        # sum_ref/sq_ref: (1, Cp) per-tile BN partials (f32)
        y = jnp.dot(p_ref[...], w_ref[...], preferred_element_type=jnp.float32)
        y = y + b_ref[...]
        y = jnp.where(y > 0, y, negative_slope * y)

        # Mask rows beyond the real N*OH*OW extent out of the statistics.
        row = (lax.broadcasted_iota(jnp.int32, (tile_m, 1), 0)
               + pl.program_id(0) * tile_m)
        valid = (row < n_valid_rows).astype(jnp.float32)

        sum_ref[...] = jnp.sum(y * valid, axis=0, keepdims=True)
        sq_ref[...] = jnp.sum(y * y * valid, axis=0, keepdims=True)

    return kernel


def _make_fused_kernel(negative_slope):
    """Pass 2: recompute conv + bias + LeakyReLU, apply fused BN scale/shift, write out."""

    def kernel(p_ref, w_ref, b_ref, scale_ref, shift_ref, o_ref):
        y = jnp.dot(p_ref[...], w_ref[...], preferred_element_type=jnp.float32)
        y = y + b_ref[...]
        y = jnp.where(y > 0, y, negative_slope * y)
        o_ref[...] = (y * scale_ref[...] + shift_ref[...]).astype(o_ref.dtype)

    return kernel


# ----------------------------------------------------------------------------- wrappers
def conv2d_leakyrelu_bn_nhwc(x_nhwc, w_oihw, bias, gamma, beta, *,
                             eps=1e-5, negative_slope=0.01, compute_dtype=None):
    """NHWC forward pass of Conv2DLeakyReLUBN (training-mode BN statistics)."""
    N, H, W, Ci = x_nhwc.shape
    Co, Ciw, KH, KW = w_oihw.shape
    assert Ciw == Ci
    OH, OW = H - KH + 1, W - KW + 1
    R = N * OH * OW                      # total valid output rows (flattened n, oh, ow)
    K = KH * KW * Ci                     # im2col contraction size
    Cp = _round_up(Co, _LANES)           # lane-dense padded channel count
    out_dtype = x_nhwc.dtype
    # Matmul operand dtype: default keeps the model dtype; jnp.bfloat16 gives native MXU
    # rate on v6e/v7x for f32 models at ~1e-2 accuracy cost (accumulation stays f32).
    compute_dtype = x_nhwc.dtype if compute_dtype is None else compute_dtype

    # Row tile: multiple of 8, capped at 512, and >=2 tiles so v7x megacore stays busy.
    tile_m = max(8, min(512, _round_up(pl.cdiv(R, 2), 8)))
    num_tiles = pl.cdiv(R, tile_m)
    r_pad = num_tiles * tile_m

    # im2col in the wrapper (XLA-fused): patch[(n,oh,ow), (kh*KW+kw)*Ci+ci]
    # matches the flattened weight ordering below.
    taps = [x_nhwc[:, kh:kh + OH, kw:kw + OW, :] for kh in range(KH) for kw in range(KW)]
    patches = jnp.concatenate(taps, axis=-1).reshape(R, K)
    patches = jnp.pad(patches, ((0, r_pad - R), (0, 0))).astype(compute_dtype)

    # One-time parameter prep (XLA): weight flattened to (K, Co), channel-padded to Cp.
    w2 = jnp.transpose(w_oihw, (2, 3, 1, 0)).reshape(K, Co)
    w2 = jnp.pad(w2, ((0, 0), (0, Cp - Co))).astype(compute_dtype)
    b2 = jnp.pad(bias.reshape(1, Co).astype(jnp.float32), ((0, 0), (0, Cp - Co)))

    # Right-sized VMEM budget: double-buffered (TILE_M x 128) f32 tiles + params + margin.
    tile_io_bytes = tile_m * _LANES * 4
    cparams = pltpu.CompilerParams(
        dimension_semantics=("parallel",),
        vmem_limit_bytes=min(32 * 1024 * 1024, 8 * tile_io_bytes + 4 * 1024 * 1024))

    patch_spec = pl.BlockSpec((tile_m, K), lambda i: (i, 0))
    w_spec = pl.BlockSpec((K, Cp), lambda i: (0, 0))
    vec_spec = pl.BlockSpec((1, Cp), lambda i: (0, 0))

    # Pass 1: per-tile BN partial sums (stats only -- no y written to HBM).
    ssum, ssq = pl.pallas_call(
        _make_stats_kernel(tile_m, R, negative_slope),
        grid=(num_tiles,),
        in_specs=[patch_spec, w_spec, vec_spec],
        out_specs=[pl.BlockSpec((None, 1, Cp), lambda i: (i, 0, 0)),
                   pl.BlockSpec((None, 1, Cp), lambda i: (i, 0, 0))],
        out_shape=[jax.ShapeDtypeStruct((num_tiles, 1, Cp), jnp.float32),
                   jax.ShapeDtypeStruct((num_tiles, 1, Cp), jnp.float32)],
        compiler_params=cparams,
    )(patches, w2, b2)

    # Tiny XLA glue: reduce partials, fold gamma/beta/mean/var into one scale/shift.
    cnt = jnp.float32(R)
    mean = jnp.sum(ssum[:, 0, :], axis=0) / cnt
    var = jnp.maximum(jnp.sum(ssq[:, 0, :], axis=0) / cnt - mean * mean, 0.0)
    g = jnp.pad(gamma.astype(jnp.float32), (0, Cp - Co))
    be = jnp.pad(beta.astype(jnp.float32), (0, Cp - Co))
    scale1 = g * lax.rsqrt(var + eps)
    shift1 = be - mean * scale1
    scale = scale1.reshape(1, Cp)
    shift = shift1.reshape(1, Cp)

    # Pass 2: recompute conv + bias + LeakyReLU fused with the BN affine; single output
    # write, lane-dense (TILE_M x 128) tiles.
    out_flat = pl.pallas_call(
        _make_fused_kernel(negative_slope),
        grid=(num_tiles,),
        in_specs=[patch_spec, w_spec, vec_spec, vec_spec, vec_spec],
        out_specs=pl.BlockSpec((tile_m, Cp), lambda i: (i, 0)),
        out_shape=jax.ShapeDtypeStruct((r_pad, Cp), out_dtype),
        compiler_params=cparams,
    )(patches, w2, b2, scale, shift)

    # Drop row/channel padding; back to NHWC (wrapper glue, fused by XLA).
    return out_flat[:R, :Co].reshape(N, OH, OW, Co)


@jax.jit
def conv2d_leakyrelu_bn(x_nchw, w_oihw, bias, gamma, beta):
    """PyTorch-style NCHW interface. The transposes are pure interface glue; an NHWC
    end-to-end model should call conv2d_leakyrelu_bn_nhwc directly."""
    x_nhwc = jnp.transpose(x_nchw, (0, 2, 3, 1))
    out_nhwc = conv2d_leakyrelu_bn_nhwc(x_nhwc, w_oihw, bias, gamma, beta)
    return jnp.transpose(out_nhwc, (0, 3, 1, 2))


# ----------------------------------------------------------------------------- reference
def _reference(x_nchw, w_oihw, bias, gamma, beta):
    """Pure-JAX reference of conv -> leakyrelu -> batchnorm (training stats)."""
    y = lax.conv_general_dilated(
        x_nchw.astype(jnp.float32), w_oihw.astype(jnp.float32),
        window_strides=(1, 1), padding="VALID",
        dimension_numbers=("NCHW", "OIHW", "NCHW"))
    y = y + bias.reshape(1, -1, 1, 1)
    y = jnp.where(y > 0, y, 0.01 * y)
    mean = jnp.mean(y, axis=(0, 2, 3), keepdims=True)
    var = jnp.mean((y - mean) ** 2, axis=(0, 2, 3), keepdims=True)
    y = (y - mean) * lax.rsqrt(var + 1e-5)
    y = y * gamma.reshape(1, -1, 1, 1) + beta.reshape(1, -1, 1, 1)
    return y.astype(x_nchw.dtype)


if __name__ == "__main__":
    key = jax.random.PRNGKey(0)
    k_x, k_w, k_b = jax.random.split(key, 3)

    N, Ci, H, W = 2, 4, 16, 16
    Co, KH, KW = 8, 3, 3

    x = jax.random.normal(k_x, (N, Ci, H, W), dtype=jnp.float32)

    # Deterministic synthetic parameter init (kaiming-uniform-like range for conv).
    fan_in = Ci * KH * KW
    bound = 1.0 / (fan_in ** 0.5)
    w = jax.random.uniform(k_w, (Co, Ci, KH, KW), jnp.float32, -bound, bound)
    b = jax.random.uniform(k_b, (Co,), jnp.float32, -bound, bound)
    gamma = jnp.ones((Co,), jnp.float32)   # BatchNorm2d default weight
    beta = jnp.zeros((Co,), jnp.float32)   # BatchNorm2d default bias

    out = conv2d_leakyrelu_bn(x, w, b, gamma, beta)
    out = jax.block_until_ready(out)

    ref = _reference(x, w, b, gamma, beta)
    assert out.shape == (N, Co, H - KH + 1, W - KW + 1), out.shape
    err = float(jnp.max(jnp.abs(out - ref)))
    assert jnp.allclose(out, ref, atol=1e-4, rtol=1e-4), f"mismatch vs reference: {err}"

    print("KERNEL_OK")
</pallas_src>

<mosaic_0001>
module attributes {stable_mosaic.version = 11 : i64} {
  func.func @kernel(%arg0: i32, %arg1: memref<200x36xf32, #tpu.memory_space<vmem>>, %arg2: memref<36x128xf32, #tpu.memory_space<vmem>>, %arg3: memref<1x128xf32, #tpu.memory_space<vmem>>, %arg4: memref<1x1x128xf32, #tpu.memory_space<vmem>>, %arg5: memref<1x1x128xf32, #tpu.memory_space<vmem>>) attributes {dimension_semantics = [#tpu.dimension_semantics<parallel>], iteration_bounds = array<i64: 2>, scalar_prefetch = 0 : i64, scratch_operands = 0 : i64, tpu.core_type = #tpu.core_type<tc>, window_params = [{transform_indices = @transform_0, window_bounds = array<i64: 200, 36>}, {pipeline_mode = #tpu.pipeline_mode<synchronous>, transform_indices = @transform_1, window_bounds = array<i64: 36, 128>}, {pipeline_mode = #tpu.pipeline_mode<synchronous>, transform_indices = @transform_2, window_bounds = array<i64: 1, 128>}, {transform_indices = @transform_3, window_bounds = array<i64: 1, 1, 128>}, {transform_indices = @transform_4, window_bounds = array<i64: 1, 1, 128>}]} {
    %c0 = arith.constant 0 : index
    %c0_0 = arith.constant 0 : index
    %0 = vector.load %arg1[%c0, %c0_0] : memref<200x36xf32, #tpu.memory_space<vmem>>, vector<200x36xf32>
    %c0_1 = arith.constant 0 : index
    %c0_2 = arith.constant 0 : index
    %1 = vector.load %arg2[%c0_1, %c0_2] : memref<36x128xf32, #tpu.memory_space<vmem>>, vector<36x128xf32>
    %cst = arith.constant dense<0.000000e+00> : vector<200x128xf32>
    %2 = tpu.matmul %0, %1, %cst {dimension_numbers = #tpu.dot_dimension_numbers<[1], [0], [0], [1], [0, 0, 1, 1], [], []>} : vector<200x36xf32>, vector<36x128xf32>, vector<200x128xf32> -> vector<200x128xf32>
    %c0_3 = arith.constant 0 : index
    %c0_4 = arith.constant 0 : index
    %3 = vector.load %arg3[%c0_3, %c0_4] : memref<1x128xf32, #tpu.memory_space<vmem>>, vector<1x128xf32>
    %4 = vector.broadcast %3 : vector<1x128xf32> to vector<200x128xf32>
    %5 = arith.addf %2, %4 : vector<200x128xf32>
    %cst_5 = arith.constant 0.000000e+00 : f32
    %6 = vector.broadcast %cst_5 : f32 to vector<200x128xf32>
    %7 = arith.cmpf ogt, %5, %6 : vector<200x128xf32>
    %cst_6 = arith.constant 0.00999999977 : f32
    %8 = vector.broadcast %cst_6 : f32 to vector<200x128xf32>
    %9 = arith.mulf %8, %5 : vector<200x128xf32>
    %10 = arith.select %7, %5, %9 : vector<200x128xi1>, vector<200x128xf32>
    %11 = tpu.iota {dimensions = array<i32: 0>} : vector<200x1xi32>
    %c200_i32 = arith.constant 200 : i32
    %12 = arith.muli %arg0, %c200_i32 : i32
    %13 = vector.broadcast %12 : i32 to vector<200x1xi32>
    %14 = arith.addi %11, %13 : vector<200x1xi32>
    %c392_i32 = arith.constant 392 : i32
    %15 = vector.broadcast %c392_i32 : i32 to vector<200x1xi32>
    %16 = arith.cmpi slt, %14, %15 : vector<200x1xi32>
    %17 = arith.extui %16 : vector<200x1xi1> to vector<200x1xi32>
    %18 = arith.sitofp %17 : vector<200x1xi32> to vector<200x1xf32>
    %19 = vector.broadcast %18 : vector<200x1xf32> to vector<200x128xf32>
    %20 = arith.mulf %10, %19 : vector<200x128xf32>
    %cst_7 = arith.constant dense<0.000000e+00> : vector<128xf32>
    %21 = vector.multi_reduction <add>, %20, %cst_7 [0] : vector<200x128xf32> to vector<128xf32>
    %22 = vector.shape_cast %21 : vector<128xf32> to vector<1x128xf32>
    %c0_8 = arith.constant 0 : index
    %c0_9 = arith.constant 0 : index
    %c0_10 = arith.constant 0 : index
    %23 = vector.load %arg4[%c0_8, %c0_9, %c0_10] : memref<1x1x128xf32, #tpu.memory_space<vmem>>, vector<1x1x128xf32>
    %24 = vector.shape_cast %23 : vector<1x1x128xf32> to vector<1x128xf32>
    %25 = vector.shape_cast %22 : vector<1x128xf32> to vector<1x1x128xf32>
    tpu.vector_store %arg4[%c0_8, %c0_9, %c0_10], %25 {strides = array<i32>} : memref<1x1x128xf32, #tpu.memory_space<vmem>>, vector<1x1x128xf32>,
    %26 = arith.mulf %10, %10 : vector<200x128xf32>
    %27 = vector.broadcast %18 : vector<200x1xf32> to vector<200x128xf32>
    %28 = arith.mulf %26, %27 : vector<200x128xf32>
    %cst_11 = arith.constant dense<0.000000e+00> : vector<128xf32>
    %29 = vector.multi_reduction <add>, %28, %cst_11 [0] : vector<200x128xf32> to vector<128xf32>
    %30 = vector.shape_cast %29 : vector<128xf32> to vector<1x128xf32>
    %c0_12 = arith.constant 0 : index
    %c0_13 = arith.constant 0 : index
    %c0_14 = arith.constant 0 : index
    %31 = vector.load %arg5[%c0_12, %c0_13, %c0_14] : memref<1x1x128xf32, #tpu.memory_space<vmem>>, vector<1x1x128xf32>
    %32 = vector.shape_cast %31 : vector<1x1x128xf32> to vector<1x128xf32>
    %33 = vector.shape_cast %30 : vector<1x128xf32> to vector<1x1x128xf32>
    tpu.vector_store %arg5[%c0_12, %c0_13, %c0_14], %33 {strides = array<i32>} : memref<1x1x128xf32, #tpu.memory_space<vmem>>, vector<1x1x128xf32>,
    return
  }
  func.func @transform_0(%arg0: i32) -> (i32, i32) {
    %c0_i32 = arith.constant 0 : i32
    %c0_i32_0 = arith.constant 0 : i32
    return %arg0, %c0_i32 : i32, i32
  }
  func.func @transform_1(%arg0: i32) -> (i32, i32) {
    %c0_i32 = arith.constant 0 : i32
    %c0_i32_0 = arith.constant 0 : i32
    %c0_i32_1 = arith.constant 0 : i32
    return %c0_i32, %c0_i32_0 : i32, i32
  }
  func.func @transform_2(%arg0: i32) -> (i32, i32) {
    %c0_i32 = arith.constant 0 : i32
    %c0_i32_0 = arith.constant 0 : i32
    %c0_i32_1 = arith.constant 0 : i32
    return %c0_i32, %c0_i32_0 : i32, i32
  }
  func.func @transform_3(%arg0: i32) -> (i32, i32, i32) {
    %c0_i32 = arith.constant 0 : i32
    %c0_i32_0 = arith.constant 0 : i32
    %c0_i32_1 = arith.constant 0 : i32
    return %arg0, %c0_i32, %c0_i32_0 : i32, i32, i32
  }
  func.func @transform_4(%arg0: i32) -> (i32, i32, i32) {
    %c0_i32 = arith.constant 0 : i32
    %c0_i32_0 = arith.constant 0 : i32
    %c0_i32_1 = arith.constant 0 : i32
    return %arg0, %c0_i32, %c0_i32_0 : i32, i32, i32
  }
}

module attributes {stable_mosaic.version = 11 : i64} {
  func.func @kernel(%arg0: i32, %arg1: memref<200x36xf32, #tpu.memory_space<vmem>>, %arg2: memref<36x128xf32, #tpu.memory_space<vmem>>, %arg3: memref<1x128xf32, #tpu.memory_space<vmem>>, %arg4: memref<1x128xf32, #tpu.memory_space<vmem>>, %arg5: memref<1x128xf32, #tpu.memory_space<vmem>>, %arg6: memref<200x128xf32, #tpu.memory_space<vmem>>) attributes {dimension_semantics = [#tpu.dimension_semantics<parallel>], iteration_bounds = array<i64: 2>, scalar_prefetch = 0 : i64, scratch_operands = 0 : i64, tpu.core_type = #tpu.core_type<tc>, window_params = [{transform_indices = @transform_0, window_bounds = array<i64: 200, 36>}, {pipeline_mode = #tpu.pipeline_mode<synchronous>, transform_indices = @transform_1, window_bounds = array<i64: 36, 128>}, {pipeline_mode = #tpu.pipeline_mode<synchronous>, transform_indices = @transform_2, window_bounds = array<i64: 1, 128>}, {pipeline_mode = #tpu.pipeline_mode<synchronous>, transform_indices = @transform_3, window_bounds = array<i64: 1, 128>}, {pipeline_mode = #tpu.pipeline_mode<synchronous>, transform_indices = @transform_4, window_bounds = array<i64: 1, 128>}, {transform_indices = @transform_5, window_bounds = array<i64: 200, 128>}]} {
    %c0 = arith.constant 0 : index
    %c0_0 = arith.constant 0 : index
    %0 = vector.load %arg1[%c0, %c0_0] : memref<200x36xf32, #tpu.memory_space<vmem>>, vector<200x36xf32>
    %c0_1 = arith.constant 0 : index
    %c0_2 = arith.constant 0 : index
    %1 = vector.load %arg2[%c0_1, %c0_2] : memref<36x128xf32, #tpu.memory_space<vmem>>, vector<36x128xf32>
    %cst = arith.constant dense<0.000000e+00> : vector<200x128xf32>
    %2 = tpu.matmul %0, %1, %cst {dimension_numbers = #tpu.dot_dimension_numbers<[1], [0], [0], [1], [0, 0, 1, 1], [], []>} : vector<200x36xf32>, vector<36x128xf32>, vector<200x128xf32> -> vector<200x128xf32>
    %c0_3 = arith.constant 0 : index
    %c0_4 = arith.constant 0 : index
    %3 = vector.load %arg3[%c0_3, %c0_4] : memref<1x128xf32, #tpu.memory_space<vmem>>, vector<1x128xf32>
    %4 = vector.broadcast %3 : vector<1x128xf32> to vector<200x128xf32>
    %5 = arith.addf %2, %4 : vector<200x128xf32>
    %cst_5 = arith.constant 0.000000e+00 : f32
    %6 = vector.broadcast %cst_5 : f32 to vector<200x128xf32>
    %7 = arith.cmpf ogt, %5, %6 : vector<200x128xf32>
    %cst_6 = arith.constant 0.00999999977 : f32
    %8 = vector.broadcast %cst_6 : f32 to vector<200x128xf32>
    %9 = arith.mulf %8, %5 : vector<200x128xf32>
    %10 = arith.select %7, %5, %9 : vector<200x128xi1>, vector<200x128xf32>
    %c0_7 = arith.constant 0 : index
    %c0_8 = arith.constant 0 : index
    %11 = vector.load %arg4[%c0_7, %c0_8] : memref<1x128xf32, #tpu.memory_space<vmem>>, vector<1x128xf32>
    %12 = vector.broadcast %11 : vector<1x128xf32> to vector<200x128xf32>
    %13 = arith.mulf %10, %12 : vector<200x128xf32>
    %c0_9 = arith.constant 0 : index
    %c0_10 = arith.constant 0 : index
    %14 = vector.load %arg5[%c0_9, %c0_10] : memref<1x128xf32, #tpu.memory_space<vmem>>, vector<1x128xf32>
    %15 = vector.broadcast %14 : vector<1x128xf32> to vector<200x128xf32>
    %16 = arith.addf %13, %15 : vector<200x128xf32>
    %c0_11 = arith.constant 0 : index
    %c0_12 = arith.constant 0 : index
    %17 = vector.load %arg6[%c0_11, %c0_12] : memref<200x128xf32, #tpu.memory_space<vmem>>, vector<200x128xf32>
    tpu.vector_store %arg6[%c0_11, %c0_12], %16 {strides = array<i32>} : memref<200x128xf32, #tpu.memory_space<vmem>>, vector<200x128xf32>,
    return
  }
  func.func @transform_0(%arg0: i32) -> (i32, i32) {
    %c0_i32 = arith.constant 0 : i32
    %c0_i32_0 = arith.constant 0 : i32
    return %arg0, %c0_i32 : i32, i32
  }
  func.func @transform_1(%arg0: i32) -> (i32, i32) {
    %c0_i32 = arith.constant 0 : i32
    %c0_i32_0 = arith.constant 0 : i32
    %c0_i32_1 = arith.constant 0 : i32
    return %c0_i32, %c0_i32_0 : i32, i32
  }
  func.func @transform_2(%arg0: i32) -> (i32, i32) {
    %c0_i32 = arith.constant 0 : i32
    %c0_i32_0 = arith.constant 0 : i32
    %c0_i32_1 = arith.constant 0 : i32
    return %c0_i32, %c0_i32_0 : i32, i32
  }
  func.func @transform_3(%arg0: i32) -> (i32, i32) {
    %c0_i32 = arith.constant 0 : i32
    %c0_i32_0 = arith.constant 0 : i32
    %c0_i32_1 = arith.constant 0 : i32
    return %c0_i32, %c0_i32_0 : i32, i32
  }
  func.func @transform_4(%arg0: i32) -> (i32, i32) {
    %c0_i32 = arith.constant 0 : i32
    %c0_i32_0 = arith.constant 0 : i32
    %c0_i32_1 = arith.constant 0 : i32
    return %c0_i32, %c0_i32_0 : i32, i32
  }
  func.func @transform_5(%arg0: i32) -> (i32, i32) {
    %c0_i32 = arith.constant 0 : i32
    %c0_i32_0 = arith.constant 0 : i32
    return %arg0, %c0_i32 : i32, i32
  }
}

</mosaic_0001>

<bundles_post_ra>
// kernel: conv2d_leakyrelu_bn.2
= control target key start
LH: loop header
LB: loop body
LE: loop exit
PB: predicated region body
PF: predicated region fallthrough
CT: control target
= control target key end

     0   :  { %s941_s15 = smov 0   ;;  %s1273_s0 = inlined_call_operand.vmem [shape: f32[400,36], index: 0, kind: input, shape index: {}]   ;;  %s1274_s1 = inlined_call_operand.vmem [shape: f32[36,128], index: 1, kind: input, shape index: {}]   ;;  %s1275_s2 = inlined_call_operand.vmem [shape: f32[1,128], index: 2, kind: input, shape index: {}]   ;;  %s1276_s3 = inlined_call_operand.vmem [shape: f32[2,1,128], index: 3, kind: output, shape index: {0}]   ;;  %s1277_s4 = inlined_call_operand.vmem [shape: f32[2,1,128], index: 4, kind: output, shape index: {1}]  }
   0x1 LB: > { %s947_s16 = sadd.s32 4294967295, %s913_s15   ;;  %p827_p0 = scmp.ge.s32.totalorder %s913_s15, 1  ;;  %s913_s15 = sphi %s941_s15, %s15_s15  }
   0x2   : > { %p166_p1 = scmp.lt.s32.totalorder %s913_s15, 3 }
   0x4   : > { %p167_p2 = pnand %p827_p0, %p166_p1 }
   0x5   : > { %s193_s21 = smul.u32 (!%p167_p2), 25, %s947_s16  ;;  %p199_p4 = scmp.lt.s32.totalorder (!%p167_p2), %s947_s16, 1 }
   0x6   : > { %170 = sbr.rel (%p167_p2) target bundleno = 249 (0xf9), region = 32 }
   0x7   : > { %p194_p3 = scmp.lt.s32.totalorder (!%p167_p2), %s193_s21, 49  ;;  %s512_s6 = smul.u32 (!%p167_p2), 200, %s947_s16 }
   0xb   : > { %v234_v0 = vld [vmem:[%s1274_s1 + $0x20] sm:$0xf]  ;;  %vm315_vm0 = vcmask 1043456   ;;  %v233_v1 = vld [vmem:[%s1274_s1 + $0x18] sm:$0xff]  ;;  %v232_v2 = vld [vmem:[%s1274_s1 + $0x10] sm:$0xff]  ;;  %s1279_s21 = smov (!%p194_p3, %s193_s21), 49  ;;  %v486_v30 = vlaneseq  ;;  %v1026_v33 = vstv %s512_s6 }
   0xc   : > { %829 = vmatpush.msk.msra.mxu0 %vm315_vm0, %v234_v0  ;;  %882 = vmatpush.msk.msra.mxu1 %vm315_vm0, %v234_v0  ;;  %v231_v3 = vld [vmem:[%s1274_s1 + $0x8] sm:$0xff]  ;;  %v230_v4 = vld [vmem:[%s1274_s1] sm:$0xff]  ;;  %s828_s28 = sshll.u32 %s1279_s21, 3  ;;  %vm239_vm1 = vcmask 293888   ;;  %v915_v58 = vmov 0.0   ;;  %s1281_s16 = smov (!%p199_p4, %s947_s16), 1 }
   0xd   : > { %883 = vmatpush.msk.msra.mxu2 %vm315_vm0, %v234_v0  ;;  %884 = vmatpush.msk.msra.mxu3 %vm315_vm0, %v234_v0  ;;  %s970_s5 = scalar_lea.vmem %s1273_s0, %s828_s28  ;;  %v1023_v31 = vshrl.u32 %v486_v30, 7  ;;  %v1035_v39 = vld [vmem:[%s1275_s2] ss:$0 sm:$0xff]  ;;  %s201_s11 = scalar_lea.vmem %s1276_s3, %s1281_s16 }
   0xe   : > { %331 = vmatpush.msra.mxu0 %v233_v1  ;;  %885 = vmatpush.msra.mxu1 %v233_v1  ;;  %v205_v5 = vld [vmem:[%s970_s5] sm:$0xff]  ;;  %v211_v6 = vld [vmem:[%s970_s5 + $0x30] sm:$0xff]  ;;  %v224_v8 = vld [vmem:[%s970_s5 + $0x98] sm:$0xff]  ;;  %s204_s14 = scalar_lea.vmem %s1277_s4, %s1281_s16 }
   0xf   : > { %886 = vmatpush.msra.mxu2 %v233_v1  ;;  %887 = vmatpush.msra.mxu3 %v233_v1  ;;  %v217_v7 = vld [vmem:[%s970_s5 + $0x60] sm:$0xff]  ;;  %v206_v9 = vld [vmem:[%s970_s5 + $0x8] sm:$0xff]  ;;  %v212_v10 = vld [vmem:[%s970_s5 + $0x38] sm:$0xff]  ;;  %v488_v32 = vadd.s32 8, %v1023_v31  ;;  %v514_v35 = vadd.s32 %v1026_v33, %v1023_v31  ;;  %v493_v38 = vadd.s32 48, %v1023_v31  ;;  %v489_v40 = vadd.s32 16, %v1023_v31 }
  0x10   : > { %332 = vmatpush.msra.mxu0 %v232_v2  ;;  %888 = vmatpush.msra.mxu1 %v232_v2  ;;  %v218_v11 = vld [vmem:[%s970_s5 + $0x68] sm:$0xff]  ;;  %v225_v12 = vld [vmem:[%s970_s5 + $0xa0] sm:$0xff]  ;;  %v207_v13 = vld [vmem:[%s970_s5 + $0x10] sm:$0xff]  ;;  %v499_v41 = vadd.s32 96, %v1023_v31  ;;  %v494_v42 = vadd.s32 56, %v1023_v31  ;;  %v490_v43 = vadd.s32 24, %v1023_v31 }
  0x11   : > { %889 = vmatpush.msra.mxu2 %v232_v2  ;;  %890 = vmatpush.msra.mxu3 %v232_v2  ;;  %v213_v14 = vld [vmem:[%s970_s5 + $0x40] sm:$0xff]  ;;  %v219_v15 = vld [vmem:[%s970_s5 + $0x70] sm:$0xff]  ;;  %v226_v16 = vld [vmem:[%s970_s5 + $0xa8] sm:$0xff]  ;;  %v515_v36 = vadd.s32 %v1026_v33, %v488_v32  ;;  %v500_v44 = vadd.s32 104, %v1023_v31  ;;  %vm539_vm2 = vcmp.lt.s32.totalorder %v514_v35, 392  ;;  %v520_v45 = vadd.s32 %v1026_v33, %v493_v38 }
  0x12   : > { %333 = vmatpush.msra.mxu0 %v231_v3  ;;  %891 = vmatpush.msra.mxu1 %v231_v3  ;;  %v208_v17 = vld [vmem:[%s970_s5 + $0x18] sm:$0xff]  ;;  %v214_v18 = vld [vmem:[%s970_s5 + $0x48] sm:$0xff]  ;;  %v227_v20 = vld [vmem:[%s970_s5 + $0xb0] sm:$0xff]  ;;  %v516_v47 = vadd.s32 %v1026_v33, %v489_v40  ;;  %v526_v48 = vadd.s32 %v1026_v33, %v499_v41  ;;  %v495_v49 = vadd.s32 64, %v1023_v31  ;;  %v521_v51 = vadd.s32 %v1026_v33, %v494_v42 }
  0x13   : > { %892 = vmatpush.msra.mxu2 %v231_v3  ;;  %893 = vmatpush.msra.mxu3 %v231_v3  ;;  %v220_v19 = vld [vmem:[%s970_s5 + $0x78] sm:$0xff]  ;;  %v209_v21 = vld [vmem:[%s970_s5 + $0x20] sm:$0xff]  ;;  %v215_v22 = vld [vmem:[%s970_s5 + $0x50] sm:$0xff]  ;;  %vm540_vm3 = vcmp.lt.s32.totalorder %v515_v36, 392  ;;  %v517_v52 = vadd.s32 %v1026_v33, %v490_v43  ;;  %v491_v53 = vadd.s32 32, %v1023_v31  ;;  %v527_v56 = vadd.s32 %v1026_v33, %v500_v44 }
  0x14   : > { %334 = vmatpush.msra.mxu0 %v230_v4  ;;  %894 = vmatpush.msra.mxu1 %v230_v4  ;;  %v221_v23 = vld [vmem:[%s970_s5 + $0x80] sm:$0xff]  ;;  %v228_v24 = vld [vmem:[%s970_s5 + $0xb8] sm:$0xff]  ;;  %v210_v25 = vld [vmem:[%s970_s5 + $0x28] sm:$0xff]  ;;  %v501_v57 = vadd.s32 112, %v1023_v31  ;;  %v855_v59 = vsel %vm539_vm2, 1.0, %v915_v58  ;;  %v1057_v60 = vsel %vm540_vm3, 1.0, %v915_v58  ;;  %v522_v63 = vadd.s32 %v1026_v33, %v495_v49 }
  0x15   : > { %830 = vmatmul.msk.f32.vlgmr.msra.gmra.mxu0 %vm239_vm1, %v205_v5  ;;  %895 = vmatpush.msra.mxu2 %v230_v4  ;;  %v216_v26 = vld [vmem:[%s970_s5 + $0x58] sm:$0xff]  ;;  %v222_v27 = vld [vmem:[%s970_s5 + $0x88] sm:$0xff]  ;;  %v229_v28 = vld [vmem:[%s970_s5 + $0xc0] sm:$0xff]  ;;  %vm545_vm4 = vcmp.lt.s32.totalorder %v520_v45, 392  ;;  %vm541_vm5 = vcmp.lt.s32.totalorder %v516_v47, 392  ;;  %vm551_vm6 = vcmp.lt.s32.totalorder %v526_v48, 392  ;;  %v518_v0 = vadd.s32 %v1026_v33, %v491_v53 }
  0x16   : > { %836 = vmatmul.msk.f32.vlgmr.msra.gmra.mxu1 %vm239_vm1, %v211_v6  ;;  %842 = vmatmul.msk.f32.vlgmr.msra.gmra.mxu2 %vm239_vm1, %v217_v7  ;;  %v223_v29 = vld [vmem:[%s970_s5 + $0x90] sm:$0xff]  ;;  %vm546_vm8 = vcmp.lt.s32.totalorder %v521_v51, 392  ;;  %vm542_vm9 = vcmp.lt.s32.totalorder %v517_v52, 392  ;;  %vm552_vm10 = vcmp.lt.s32.totalorder %v527_v56, 392  ;;  %v528_v2 = vadd.s32 %v1026_v33, %v501_v57 }
  0x17   : > { %896 = vmatpush.msra.mxu3 %v230_v4  ;;  %v496_v3 = vadd.s32 72, %v1023_v31  ;;  %v861_v5 = vsel %vm545_vm4, 1.0, %v915_v58  ;;  %v1067_v6 = vsel %vm541_vm5, 1.0, %v915_v58  ;;  %vm547_vm12 = vcmp.lt.s32.totalorder %v522_v63, 392 }
  0x18   : > { %849 = vmatmul.msk.f32.vlgmr.msra.gmra.mxu3 %vm239_vm1, %v224_v8  ;;  %vm543_vm13 = vcmp.lt.s32.totalorder %v518_v0, 392  ;;  %vm553_vm14 = vcmp.lt.s32.totalorder %v528_v2, 392  ;;  %v492_v38 = vadd.s32 40, %v1023_v31 }
  0x1d   : > { %831 = vmatmul.msk.f32.gmra.mxu0 %vm239_vm1, %v206_v9  ;;  %v1072_v9 = vsel %vm551_vm6, 1.0, %v915_v58 }
  0x1e   : > { %837 = vmatmul.msk.f32.gmra.mxu1 %vm239_vm1, %v212_v10  ;;  %843 = vmatmul.msk.f32.gmra.mxu2 %vm239_vm1, %v218_v11  ;;  %v1075_v10 = vsel %vm546_vm8, 1.0, %v915_v58  ;;  %v1078_v11 = vsel %vm542_vm9, 1.0, %v915_v58 }
  0x20   : > { %850 = vmatmul.msk.f32.gmra.mxu3 %vm239_vm1, %v225_v12 }
  0x25   : > { %832 = vmatmul.msk.f32.gmra.mxu0 %vm239_vm1, %v207_v13  ;;  %v1081_v13 = vsel %vm552_vm10, 1.0, %v915_v58 }
  0x26   : > { %838 = vmatmul.msk.f32.gmra.mxu1 %vm239_vm1, %v213_v14  ;;  %844 = vmatmul.msk.f32.gmra.mxu2 %vm239_vm1, %v219_v15 }
  0x28   : > { %851 = vmatmul.msk.f32.gmra.mxu3 %vm239_vm1, %v226_v16 }
  0x2d   : > { %833 = vmatmul.msk.f32.gmra.mxu0 %vm239_vm1, %v208_v17  ;;  %v523_v17 = vadd.s32 %v1026_v33, %v496_v3 }
  0x2e   : > { %839 = vmatmul.msk.f32.gmra.mxu1 %vm239_vm1, %v214_v18  ;;  %845 = vmatmul.msk.f32.gmra.mxu2 %vm239_vm1, %v220_v19  ;;  %v506_v18 = vadd.s32 152, %v1023_v31 }
  0x30   : > { %852 = vmatmul.msk.f32.gmra.mxu3 %vm239_vm1, %v227_v20 }
  0x35   : > { %834 = vmatmul.msk.f32.gmra.mxu0 %vm239_vm1, %v209_v21 }
  0x36   : > { %840 = vmatmul.msk.f32.gmra.mxu1 %vm239_vm1, %v215_v22  ;;  %846 = vmatmul.msk.f32.gmra.mxu2 %vm239_vm1, %v221_v23  ;;  %v1088_v23 = vsel %vm547_vm12, 1.0, %v915_v58 }
  0x38   : > { %853 = vmatmul.msk.f32.gmra.mxu3 %vm239_vm1, %v228_v24 }
  0x3d   : > { %835 = vmatmul.msk.f32.gmra.mxu0 %vm239_vm1, %v210_v25  ;;  %v1091_v25 = vsel %vm543_vm13, 1.0, %v915_v58 }
  0x3e   : > { %841 = vmatmul.msk.f32.gmra.mxu1 %vm239_vm1, %v216_v26  ;;  %847 = vmatmul.msk.f32.gmra.mxu2 %vm239_vm1, %v222_v27 }
  0x40   : > { %854 = vmatmul.msk.f32.gmra.mxu3 %vm239_vm1, %v229_v28 }
  0x46   : > { %848 = vmatmul.msk.f32.gmra.mxu2 %vm239_vm1, %v223_v29  ;;  %v1095_v29 = vsel %vm553_vm14, 1.0, %v915_v58  ;;  %vm548_vm1 = vcmp.lt.s32.totalorder %v523_v17, 392 }
  0x92   : > { %v336_v34 = vpop.f32.mrf.mxu0 }
  0x93   : > { %v354_v37 = vpop.f32.mrf.mxu1  ;;  %v337_v46 = vadd.f32 %v1035_v39, %v336_v34  ;;  %v533_v34 = vadd.s32 %v1026_v33, %v506_v18 }
  0x94   : > { %v355_v55 = vadd.f32 %v1035_v39, %v354_v37 }
  0x95   : > { %v436_v62 = vmul.f32 0.01, %v337_v46  ;;  %vm411_vm7 = vcmp.gt.f32.partialorder %v337_v46, 0.0  ;;  %vm558_vm4 = vcmp.lt.s32.totalorder %v533_v34, 392 }
  0x96   : > { %v442_v1 = vmul.f32 0.01, %v355_v55  ;;  %vm417_vm11 = vcmp.gt.f32.partialorder %v355_v55, 0.0  ;;  %v874_v63 = vsel %vm558_vm4, 1.0, %v915_v58 }
  0x97   : > { %v461_v7 = vsel %vm411_vm7, %v337_v46, %v436_v62  ;;  %v1107_v46 = vsel %vm548_vm1, 1.0, %v915_v58 }
  0x98   : > { %v467_v15 = vsel %vm417_vm11, %v355_v55, %v442_v1  ;;  %v670_v19 = vmul.f32 %v461_v7, %v461_v7  ;;  %v614_v27 = vmul.f32 %v855_v59, %v461_v7 }
  0x99   : > { %v372_v50 = vpop.f32.mrf.mxu2  ;;  %v676_v28 = vmul.f32 %v467_v15, %v467_v15  ;;  %v1097_v30 = vmul.f32 %v861_v5, %v467_v15 }
  0x9a   : > { %v339_v54 = vpop.f32.mrf.mxu0  ;;  %v373_v8 = vadd.f32 %v1035_v39, %v372_v50  ;;  %v695_v35 = vmul.f32 %v855_v59, %v670_v19  ;;  %v502_v50 = vadd.s32 120, %v1023_v31  ;;  %v519_v59 = vadd.s32 %v1026_v33, %v492_v38 }
  0x9b   : > { %v357_v61 = vpop.f32.mrf.mxu1  ;;  %v340_v4 = vadd.f32 %v1035_v39, %v339_v54  ;;  %v393_v14 = vpop.f32.mrf.mxu3  ;;  %v1103_v43 = vmul.f32 %v861_v5, %v676_v28 }
  0x9c   : > { %v358_v21 = vadd.f32 %v1035_v39, %v357_v61  ;;  %v448_v24 = vmul.f32 0.01, %v373_v8  ;;  %v394_v26 = vadd.f32 %v1035_v39, %v393_v14  ;;  %vm423_vm0 = vcmp.gt.f32.partialorder %v373_v8, 0.0 }
  0x9d   : > { %v437_v20 = vmul.f32 0.01, %v340_v4  ;;  %vm412_vm15 = vcmp.gt.f32.partialorder %v340_v4, 0.0  ;;  %v529_v15 = vadd.s32 %v1026_v33, %v502_v50  ;;  %vm544_vm9 = vcmp.lt.s32.totalorder %v519_v59, 392 }
  0x9e   : > { %v443_v37 = vmul.f32 0.01, %v358_v21  ;;  %v473_v40 = vsel %vm423_vm0, %v373_v8, %v448_v24  ;;  %vm418_vm2 = vcmp.gt.f32.partialorder %v358_v21, 0.0  ;;  %v455_v42 = vmul.f32 0.01, %v394_v26 }
  0x9f   : > { %v462_v36 = vsel %vm412_vm15, %v340_v4, %v437_v20  ;;  %vm430_vm3 = vcmp.gt.f32.partialorder %v394_v26, 0.0  ;;  %v682_v52 = vmul.f32 %v473_v40, %v473_v40  ;;  %v1115_v61 = vmul.f32 %v1072_v9, %v473_v40 }
  0xa0   : > { %v671_v47 = vmul.f32 %v462_v36, %v462_v36  ;;  %v615_v51 = vmul.f32 %v1057_v60, %v462_v36  ;;  %v468_v53 = vsel %vm418_vm2, %v358_v21, %v443_v37  ;;  %v480_v57 = vsel %vm430_vm3, %v394_v26, %v455_v42 }
  0xa1   : > { %v375_v12 = vpop.f32.mrf.mxu2  ;;  %v677_v2 = vmul.f32 %v468_v53, %v468_v53  ;;  %v1120_v5 = vmul.f32 %v1072_v9, %v682_v52  ;;  %v1123_v7 = vmul.f32 %v1075_v10, %v468_v53  ;;  %v689_v8 = vmul.f32 %v480_v57, %v480_v57 }
  0xa2   : > { %v342_v16 = vpop.f32.mrf.mxu0  ;;  %v376_v41 = vadd.f32 %v1035_v39, %v375_v12  ;;  %v696_v0 = vmul.f32 %v1057_v60, %v671_v47  ;;  %v639_v4 = vadd.f32 %v615_v51, %v614_v27  ;;  %vm554_vm10 = vcmp.lt.s32.totalorder %v529_v15, 392 }
  0xa3   : > { %v360_v22 = vpop.f32.mrf.mxu1  ;;  %v343_v32 = vadd.f32 %v1035_v39, %v342_v16  ;;  %v396_v3 = vpop.f32.mrf.mxu3  ;;  %v497_v16 = vadd.s32 80, %v1023_v31  ;;  %v1129_v9 = vmul.f32 %v1075_v10, %v677_v2  ;;  %v1135_v28 = vmul.f32 %v874_v63, %v689_v8 }
  0xa4   : > { %v361_v44 = vadd.f32 %v1035_v39, %v360_v22  ;;  %v449_v56 = vmul.f32 0.01, %v376_v41  ;;  %vm424_vm6 = vcmp.gt.f32.partialorder %v376_v41, 0.0  ;;  %v720_v20 = vadd.f32 %v696_v0, %v695_v35 }
  0xa5   : > { %v438_v48 = vmul.f32 0.01, %v343_v32  ;;  %vm413_vm5 = vcmp.gt.f32.partialorder %v343_v32, 0.0  ;;  %v1131_v22 = vmul.f32 %v874_v63, %v480_v57  ;;  %v524_v35 = vadd.s32 %v1026_v33, %v497_v16 }
  0xa6   : > { %v444_v62 = vmul.f32 0.01, %v361_v44  ;;  %vm419_vm7 = vcmp.gt.f32.partialorder %v361_v44, 0.0  ;;  %v474_v14 = vsel %vm424_vm6, %v376_v41, %v449_v56  ;;  %v860_v41 = vsel %vm544_vm9, 1.0, %v915_v58 }
  0xa7   : > { %v463_v1 = vsel %vm413_vm5, %v343_v32, %v438_v48  ;;  %v683_v26 = vmul.f32 %v474_v14, %v474_v14  ;;  %v1143_v42 = vadd.f32 %v1035_v39, %v396_v3  ;;  %v1156_v50 = vsel %vm554_vm10, 1.0, %v915_v58 }
  0xa8   : > { %v672_v17 = vmul.f32 %v463_v1, %v463_v1  ;;  %v469_v60 = vsel %vm419_vm7, %v361_v44, %v444_v62  ;;  %v616_v24 = vmul.f32 %v1067_v6, %v463_v1  ;;  %vm549_vm13 = vcmp.lt.s32.totalorder %v524_v35, 392 }
  0xa9   : > { %v378_v45 = vpop.f32.mrf.mxu2  ;;  %v678_v36 = vmul.f32 %v469_v60, %v469_v60  ;;  %v1149_v47 = vmul.f32 %v1081_v13, %v683_v26  ;;  %vm431_vm14 = vcmp.gt.f32.partialorder %v1143_v42, 0.0  ;;  %v1169_v1 = vsel %vm549_vm13, 1.0, %v915_v58 }
  0xaa   : > { %v345_v49 = vpop.f32.mrf.mxu0  ;;  %v379_v18 = vadd.f32 %v1035_v39, %v378_v45  ;;  %v697_v10 = vmul.f32 %v1067_v6, %v672_v17  ;;  %v1146_v45 = vmul.f32 %v1081_v13, %v474_v14  ;;  %v640_v48 = vadd.f32 %v639_v4, %v616_v24 }
  0xab   : > { %v363_v54 = vpop.f32.mrf.mxu1  ;;  %v346_v55 = vadd.f32 %v1035_v39, %v345_v49  ;;  %v1152_v49 = vmul.f32 %v1088_v23, %v469_v60  ;;  %v1158_v51 = vpop.f32.mrf.mxu3  ;;  %v1161_v53 = vmul.f32 %v1088_v23, %v678_v36  ;;  %v507_v13 = vadd.s32 160, %v1023_v31 }
  0xac   : > { %v450_v38 = vmul.f32 0.01, %v379_v18  ;;  %vm425_vm12 = vcmp.gt.f32.partialorder %v379_v18, 0.0  ;;  %v364_v40 = vadd.f32 %v1035_v39, %v363_v54  ;;  %v721_v52 = vadd.f32 %v720_v20, %v697_v10 }
  0xad   : > { %v439_v12 = vmul.f32 0.01, %v346_v55  ;;  %vm414_vm8 = vcmp.gt.f32.partialorder %v346_v55, 0.0  ;;  %v456_v14 = vmul.f32 0.01, %v1143_v42  ;;  %v503_v35 = vadd.s32 128, %v1023_v31 }
  0xae   : > { %v475_v54 = vsel %vm425_vm12, %v379_v18, %v450_v38  ;;  %v445_v59 = vmul.f32 0.01, %v364_v40  ;;  %vm420_vm15 = vcmp.gt.f32.partialorder %v364_v40, 0.0 }
  0xaf   : > { %v464_v34 = vsel %vm414_vm8, %v346_v55, %v439_v12  ;;  %v1173_v2 = vmul.f32 %v1095_v29, %v475_v54  ;;  %v684_v3 = vmul.f32 %v475_v54, %v475_v54 }
  0xb0   : > { %v673_v44 = vmul.f32 %v464_v34, %v464_v34  ;;  %v617_v56 = vmul.f32 %v1078_v11, %v464_v34  ;;  %v470_v17 = vsel %vm420_vm15, %v364_v40, %v445_v59 }
  0xb1   : > { %v381_v19 = vpop.f32.mrf.mxu2  ;;  %v1183_v36 = vmul.f32 %v1095_v29, %v684_v3 }
  0xb2   : > { %v348_v21 = vpop.f32.mrf.mxu0  ;;  %v698_v63 = vmul.f32 %v1078_v11, %v673_v44  ;;  %v498_v11 = vadd.s32 88, %v1023_v31  ;;  %v641_v15 = vadd.f32 %v640_v48, %v617_v56  ;;  %v382_v60 = vadd.f32 %v1035_v39, %v381_v19 }
  0xb3   : > { %v349_v27 = vadd.f32 %v1035_v39, %v348_v21  ;;  %v366_v32 = vpop.f32.mrf.mxu1  ;;  %v534_v21 = vadd.s32 %v1026_v33, %v507_v13  ;;  %v1187_v44 = vpop.f32.mrf.mxu3  ;;  %v679_v56 = vmul.f32 %v470_v17, %v470_v17 }
  0xb4   : > { %v367_v4 = vadd.f32 %v1035_v39, %v366_v32  ;;  %v722_v18 = vadd.f32 %v721_v52, %v698_v63  ;;  %v451_v40 = vmul.f32 0.01, %v382_v60  ;;  %vm426_vm2 = vcmp.gt.f32.partialorder %v382_v60, 0.0 }
  0xb5   : > { %vm415_vm11 = vcmp.gt.f32.partialorder %v349_v27, 0.0  ;;  %v440_v37 = vmul.f32 0.01, %v349_v27  ;;  %vm559_vm5 = vcmp.lt.s32.totalorder %v534_v21, 392  ;;  %v505_v21 = vadd.s32 144, %v1023_v31 }
  0xb6   : > { %v446_v34 = vmul.f32 0.01, %v367_v4  ;;  %vm421_vm1 = vcmp.gt.f32.partialorder %v367_v4, 0.0 }
  0xb7   : > { %v465_v6 = vsel %vm415_vm11, %v349_v27, %v440_v37 }
  0xb8   : > { %v674_v57 = vmul.f32 %v465_v6, %v465_v6  ;;  %v618_v23 = vmul.f32 %v1091_v25, %v465_v6  ;;  %v623_v6 = vmul.f32 %v1107_v46, %v470_v17  ;;  %v471_v13 = vsel %vm421_vm1, %v367_v4, %v446_v34 }
  0xb9   : > { %v384_v55 = vpop.f32.mrf.mxu2  ;;  %v680_v63 = vmul.f32 %v471_v13, %v471_v13  ;;  %v504_v4 = vadd.s32 136, %v1023_v31 }
  0xba   : > { %v351_v62 = vpop.f32.mrf.mxu0  ;;  %v699_v16 = vmul.f32 %v1091_v25, %v674_v57  ;;  %v642_v26 = vadd.f32 %v641_v15, %v618_v23  ;;  %v525_v25 = vadd.s32 %v1026_v33, %v498_v11  ;;  %v385_v48 = vadd.f32 %v1035_v39, %v384_v55 }
  0xbb   : > { %v352_v0 = vadd.f32 %v1035_v39, %v351_v62  ;;  %v369_v8 = vpop.f32.mrf.mxu1  ;;  %v1195_v57 = vsel %vm431_vm14, %v1143_v42, %v456_v14  ;;  %v476_v55 = vsel %vm426_vm2, %v382_v60, %v451_v40 }
  0xbc   : > { %v370_v24 = vadd.f32 %v1035_v39, %v369_v8  ;;  %v723_v19 = vadd.f32 %v722_v18, %v699_v16  ;;  %vm550_vm4 = vcmp.lt.s32.totalorder %v525_v25, 392  ;;  %vm427_vm6 = vcmp.gt.f32.partialorder %v385_v48, 0.0 }
  0xbd   : > { %vm416_vm0 = vcmp.gt.f32.partialorder %v352_v0, 0.0  ;;  %v441_v12 = vmul.f32 0.01, %v352_v0  ;;  %v866_v42 = vsel %vm550_vm4, 1.0, %v915_v58  ;;  %v704_v8 = vmul.f32 %v1107_v46, %v679_v56 }
  0xbe   : > { %v447_v52 = vmul.f32 0.01, %v370_v24  ;;  %vm422_vm3 = vcmp.gt.f32.partialorder %v370_v24, 0.0  ;;  %v705_v16 = vmul.f32 %v1169_v1, %v680_v63 }
  0xbf   : > { %v466_v20 = vsel %vm416_vm0, %v352_v0, %v441_v12 }
  0xc0   : > { %v619_v27 = vmul.f32 %v860_v41, %v466_v20  ;;  %v675_v32 = vmul.f32 %v466_v20, %v466_v20  ;;  %v472_v0 = vsel %vm422_vm3, %v370_v24, %v447_v52  ;;  %v531_v20 = vadd.s32 %v1026_v33, %v504_v4  ;;  %v405_v24 = vpop.f32.mrf.mxu3 }
  0xc1   : > { %v387_v10 = vpop.f32.mrf.mxu2  ;;  %v681_v11 = vmul.f32 %v472_v0, %v472_v0  ;;  %v625_v60 = vmul.f32 %v866_v42, %v472_v0 }
  0xc2   : > { %v643_v37 = vadd.f32 %v642_v26, %v619_v27  ;;  %v700_v38 = vmul.f32 %v860_v41, %v675_v32  ;;  %v530_v41 = vadd.s32 %v1026_v33, %v503_v35  ;;  %vm556_vm9 = vcmp.lt.s32.totalorder %v531_v20, 392 }
  0xc3   : > { %v706_v35 = vmul.f32 %v866_v42, %v681_v11  ;;  %v872_v56 = vsel %vm556_vm9, 1.0, %v915_v58 }
  0xc4   : > { %v644_v29 = vadd.f32 %v643_v37, %v1097_v30  ;;  %v724_v54 = vadd.f32 %v723_v19, %v700_v38  ;;  %v452_v30 = vmul.f32 0.01, %v385_v48  ;;  %vm555_vm7 = vcmp.lt.s32.totalorder %v530_v41, 392 }
  0xc5   : > { %v871_v26 = vsel %vm555_vm7, 1.0, %v915_v58  ;;  %v509_v41 = vadd.s32 176, %v1023_v31 }
  0xc6   : > { %v645_v59 = vadd.f32 %v644_v29, %v1123_v7  ;;  %v725_v62 = vadd.f32 %v724_v54, %v1103_v43  ;;  %v624_v7 = vmul.f32 %v1169_v1, %v471_v13  ;;  %v1207_v43 = vsel %vm559_vm5, 1.0, %v915_v58 }
  0xc7   : > { %v477_v17 = vsel %vm427_vm6, %v385_v48, %v452_v30  ;;  %v400_v1 = vadd.f32 %v1035_v39, %v1158_v51  ;;  %v508_v51 = vadd.s32 168, %v1023_v31  ;;  %v406_v30 = vadd.f32 %v1035_v39, %v405_v24 }
  0xc8   : > { %v726_v23 = vadd.f32 %v725_v62, %v1129_v9  ;;  %v646_v3 = vadd.f32 %v645_v59, %v1152_v49  ;;  %v388_v9 = vadd.f32 %v1035_v39, %v387_v10  ;;  %v685_v49 = vmul.f32 %v476_v55, %v476_v55  ;;  %v408_v42 = vpop.f32.mrf.mxu3 }
  0xc9   : > { %v390_v15 = vpop.f32.mrf.mxu2  ;;  %v629_v10 = vmul.f32 %v1156_v50, %v476_v55  ;;  %v686_v37 = vmul.f32 %v477_v17, %v477_v17  ;;  %v630_v48 = vmul.f32 %v871_v26, %v477_v17  ;;  %vm432_vm10 = vcmp.gt.f32.partialorder %v400_v1, 0.0 }
  0xca   : > { %v647_v12 = vadd.f32 %v646_v3, %v623_v6  ;;  %v727_v14 = vadd.f32 %v726_v23, %v1161_v53  ;;  %v1217_v53 = vmul.f32 %v1195_v57, %v1195_v57  ;;  %v391_v27 = vadd.f32 %v1035_v39, %v390_v15 }
  0xcb   : > { %v453_v25 = vmul.f32 0.01, %v388_v9  ;;  %v710_v19 = vmul.f32 %v1156_v50, %v685_v49  ;;  %vm428_vm8 = vcmp.gt.f32.partialorder %v388_v9, 0.0  ;;  %v532_v6 = vadd.s32 %v1026_v33, %v505_v21 }
  0xcc   : > { %v648_v46 = vadd.f32 %v647_v12, %v624_v7  ;;  %v728_v18 = vadd.f32 %v727_v14, %v704_v8  ;;  %v454_v52 = vmul.f32 0.01, %v391_v27  ;;  %vm429_vm11 = vcmp.gt.f32.partialorder %v391_v27, 0.0 }
  0xcd   : > { %v478_v13 = vsel %vm428_vm8, %v388_v9, %v453_v25  ;;  %v457_v50 = vmul.f32 0.01, %v400_v1  ;;  %v711_v59 = vmul.f32 %v871_v26, %v686_v37  ;;  %vm557_vm12 = vcmp.lt.s32.totalorder %v532_v6, 392 }
  0xce   : > { %v729_v32 = vadd.f32 %v728_v18, %v705_v16  ;;  %v649_v34 = vadd.f32 %v648_v46, %v625_v60  ;;  %v687_v63 = vmul.f32 %v478_v13, %v478_v13  ;;  %v631_v0 = vmul.f32 %v872_v56, %v478_v13 }
  0xcf   : > { %v511_v14 = vadd.s32 192, %v1023_v31  ;;  %v482_v11 = vsel %vm432_vm10, %v400_v1, %v457_v50  ;;  %vm434_vm0 = vcmp.gt.f32.partialorder %v406_v30, 0.0  ;;  %v459_v46 = vmul.f32 0.01, %v406_v30 }
  0xd0   : > { %v650_v38 = vadd.f32 %v649_v34, %v1115_v61  ;;  %v730_v40 = vadd.f32 %v729_v32, %v706_v35  ;;  %v403_v61 = vadd.f32 %v1035_v39, %v1187_v44  ;;  %v510_v44 = vadd.s32 184, %v1023_v31 }
  0xd1   : > { %v712_v9 = vmul.f32 %v872_v56, %v687_v63  ;;  %v538_v31 = vadd.s32 %v1026_v33, %v511_v14  ;;  %v634_v24 = vmul.f32 %v1207_v43, %v1195_v57  ;;  %v691_v26 = vmul.f32 %v482_v11, %v482_v11 }
  0xd2   : > { %v651_v29 = vadd.f32 %v650_v38, %v1146_v45  ;;  %v731_v54 = vadd.f32 %v730_v40, %v1120_v5  ;;  %v535_v45 = vadd.s32 %v1026_v33, %v508_v51  ;;  %v479_v5 = vsel %vm429_vm11, %v391_v27, %v454_v52 }
  0xd3   : > { %vm433_vm13 = vcmp.gt.f32.partialorder %v403_v61, 0.0  ;;  %v458_v4 = vmul.f32 0.01, %v403_v61  ;;  %v688_v12 = vmul.f32 %v479_v5, %v479_v5  ;;  %v537_v17 = vadd.s32 %v1026_v33, %v510_v44 }
  0xd4   : > { %v732_v62 = vadd.f32 %v731_v54, %v1149_v47  ;;  %v652_v55 = vadd.f32 %v651_v29, %v1173_v2  ;;  %v536_v47 = vadd.s32 %v1026_v33, %v509_v41  ;;  %v873_v2 = vsel %vm557_vm12, 1.0, %v915_v58 }
  0xd5   : > { %vm560_vm14 = vcmp.lt.s32.totalorder %v535_v45, 392  ;;  %v632_v16 = vmul.f32 %v873_v2, %v479_v5  ;;  %v483_v60 = vsel %vm433_vm13, %v403_v61, %v458_v4  ;;  %v713_v21 = vmul.f32 %v873_v2, %v688_v12 }
  0xd6   : > { %v653_v23 = vadd.f32 %v652_v55, %v629_v10  ;;  %v733_v3 = vadd.f32 %v732_v62, %v1183_v36  ;;  %v409_v36 = vadd.f32 %v1035_v39, %v408_v42  ;;  %vm561_vm15 = vcmp.lt.s32.totalorder %v536_v47, 392 }
  0xd7   : > { %v876_v39 = vsel %vm560_vm14, 1.0, %v915_v58  ;;  %vm562_vm1 = vcmp.lt.s32.totalorder %v537_v17, 392  ;;  %v715_v34 = vmul.f32 %v1207_v43, %v1217_v53  ;;  %v877_v35 = vsel %vm561_vm15, 1.0, %v915_v58 }
  0xd8   : > { %v654_v8 = vadd.f32 %v653_v23, %v630_v48  ;;  %v734_v7 = vadd.f32 %v733_v3, %v710_v19  ;;  %v460_v1 = vmul.f32 0.01, %v409_v36  ;;  %vm435_vm2 = vcmp.gt.f32.partialorder %v409_v36, 0.0 }
  0xd9   : > { %v692_v33 = vmul.f32 %v483_v60, %v483_v60  ;;  %v484_v25 = vsel %vm434_vm0, %v406_v30, %v459_v46  ;;  %v635_v57 = vmul.f32 %v876_v39, %v482_v11  ;;  %vm563_vm3 = vcmp.lt.s32.totalorder %v538_v31, 392 }
  0xda   : > { %v655_v15 = vadd.f32 %v654_v8, %v631_v0  ;;  %v735_v49 = vadd.f32 %v734_v7, %v711_v59  ;;  %v716_v37 = vmul.f32 %v876_v39, %v691_v26  ;;  %v485_v38 = vsel %vm435_vm2, %v409_v36, %v460_v1 }
  0xdb   : > { %v636_v40 = vmul.f32 %v877_v35, %v483_v60  ;;  %v693_v51 = vmul.f32 %v484_v25, %v484_v25  ;;  %v717_v43 = vmul.f32 %v877_v35, %v692_v33  ;;  %v879_v53 = vsel %vm563_vm3, 1.0, %v915_v58 }
  0xdc   : > { %v736_v18 = vadd.f32 %v735_v49, %v712_v9  ;;  %v656_v20 = vadd.f32 %v655_v15, %v632_v16  ;;  %v694_v13 = vmul.f32 %v485_v38, %v485_v38  ;;  %v638_v61 = vmul.f32 %v879_v53, %v485_v38 }
  0xde   : > { %v657_v27 = vadd.f32 %v656_v20, %v1131_v22  ;;  %v737_v32 = vadd.f32 %v736_v18, %v713_v21  ;;  %v878_v22 = vsel %vm562_vm1, 1.0, %v915_v58  ;;  %v719_v62 = vmul.f32 %v879_v53, %v694_v13 }
  0xdf   : > { %v637_v52 = vmul.f32 %v878_v22, %v484_v25 }
  0xe0   : > { %v658_v10 = vadd.f32 %v657_v27, %v634_v24  ;;  %v738_v19 = vadd.f32 %v737_v32, %v1135_v28  ;;  %v718_v28 = vmul.f32 %v878_v22, %v693_v51 }
  0xe2   : > { %v739_v6 = vadd.f32 %v738_v19, %v715_v34  ;;  %v659_v48 = vadd.f32 %v658_v10, %v635_v57 }
  0xe4   : > { %v660_v29 = vadd.f32 %v659_v48, %v636_v40  ;;  %v740_v54 = vadd.f32 %v739_v6, %v716_v37 }
  0xe6   : > { %v661_v50 = vadd.f32 %v660_v29, %v637_v52  ;;  %v741_v56 = vadd.f32 %v740_v54, %v717_v43 }
  0xe8   : > { %v742_v41 = vadd.f32 %v741_v56, %v718_v28  ;;  %v662_v59 = vadd.f32 %v661_v50, %v638_v61 }
  0xea   : > { %v663_v55 = vrot.slane %v662_v59, 4  ;;  %v743_v45 = vadd.f32 %v742_v41, %v719_v62 }
  0xec   : > { %v664_v63 = vadd.f32 %v663_v55, %v662_v59  ;;  %v744_v5 = vrot.slane %v743_v45, 4 }
  0xee   : > { %v665_v30 = vrot.slane %v664_v63, 2  ;;  %v745_v0 = vadd.f32 %v744_v5, %v743_v45 }
  0xf0   : > { %v666_v58 = vadd.f32 %v665_v30, %v664_v63  ;;  %v746_v23 = vrot.slane %v745_v0, 2 }
  0xf2   : > { %v667_v3 = vrot.slane %v666_v58, 1  ;;  %v747_v44 = vadd.f32 %v746_v23, %v745_v0 }
  0xf4   : > { %v668_v42 = vadd.f32 %v667_v3, %v666_v58  ;;  %v748_v4 = vrot.slane %v747_v44, 1 }
  0xf6   : > { %669 = vst [vmem:[%s201_s11] sm:$0x1] %v668_v42  ;;  %v749_v47 = vadd.f32 %v748_v4, %v747_v44 }
  0xf8   : > { %750 = vst [vmem:[%s204_s14] sm:$0x1] %v749_v47 }
  0xf9 PF: > { %s15_s15 = sadd.s32 1, %s913_s15  }
  0xfa   : > { %p12_p5 = scmp.ge.s32.totalorder %s15_s15, 4  }
  0xfc   :  { %14 = sbr.rel (!%p12_p5) target bundleno = 1 (0x1), region = 74 }

// kernel: conv2d_leakyrelu_bn.3
= control target key start
LH: loop header
LB: loop body
LE: loop exit
PB: predicated region body
PF: predicated region fallthrough
CT: control target
= control target key end

     0   :  { %s747_s18 = smov 0   ;;  %s955_s0 = inlined_call_operand.vmem [shape: f32[400,36], index: 0, kind: input, shape index: {}]   ;;  %s956_s1 = inlined_call_operand.vmem [shape: f32[36,128], index: 1, kind: input, shape index: {}]   ;;  %s957_s2 = inlined_call_operand.vmem [shape: f32[1,128], index: 2, kind: input, shape index: {}]   ;;  %s958_s3 = inlined_call_operand.vmem [shape: f32[1,128], index: 3, kind: input, shape index: {}]   ;;  %s959_s4 = inlined_call_operand.vmem [shape: f32[1,128], index: 4, kind: input, shape index: {}]   ;;  %s960_s5 = inlined_call_operand.vmem [shape: f32[400,128], index: 5, kind: output, shape index: {}]  }
   0x1 LB: > { %s648_s19 = sadd.s32 4294967295, %s715_s18   ;;  %p652_p0 = scmp.ge.s32.totalorder %s715_s18, 1  ;;  %s715_s18 = sphi %s747_s18, %s15_s18  }
   0x2   : > { %p188_p1 = scmp.lt.s32.totalorder %s715_s18, 3 }
   0x4   : > { %p189_p2 = pnand %p652_p0, %p188_p1 }
   0x5   : > { %s216_s24 = smul.u32 (!%p189_p2), 25, %s648_s19 }
   0x6   : > { %192 = sbr.rel (%p189_p2) target bundleno = 211 (0xd3), region = 40 }
   0x7   : > { %p217_p3 = scmp.lt.s32.totalorder (!%p189_p2), %s216_s24, 49 }
   0xb   : > { %v257_v0 = vld [vmem:[%s956_s1 + $0x20] sm:$0xf]  ;;  %vm338_vm0 = vcmask 1043456   ;;  %v256_v1 = vld [vmem:[%s956_s1 + $0x18] sm:$0xff]  ;;  %v255_v2 = vld [vmem:[%s956_s1 + $0x10] sm:$0xff]  ;;  %s962_s24 = smov (!%p217_p3, %s216_s24), 49 }
   0xc   : > { %684 = vmatpush.msk.msra.mxu2 %vm338_vm0, %v257_v0  ;;  %685 = vmatpush.msk.msra.mxu3 %vm338_vm0, %v257_v0  ;;  %v254_v3 = vld [vmem:[%s956_s1 + $0x8] sm:$0xff]  ;;  %v253_v4 = vld [vmem:[%s956_s1] sm:$0xff]  ;;  %s653_s6 = sshll.u32 %s962_s24, 3  ;;  %vm262_vm1 = vcmask 293888  }
   0xd   : > { %655 = vmatpush.msk.msra.mxu0 %vm338_vm0, %v257_v0  ;;  %683 = vmatpush.msk.msra.mxu1 %vm338_vm0, %v257_v0  ;;  %s778_s9 = scalar_lea.vmem %s955_s0, %s653_s6  ;;  %v833_v30 = vld [vmem:[%s957_s2] ss:$0 sm:$0xff]  ;;  %s858_s19 = scalar_lea.vmem %s960_s5, %s653_s6 }
   0xe   : > { %687 = vmatpush.msra.mxu2 %v256_v1  ;;  %688 = vmatpush.msra.mxu3 %v256_v1  ;;  %v240_v5 = vld [vmem:[%s778_s9 + $0x60] sm:$0xff]  ;;  %v247_v6 = vld [vmem:[%s778_s9 + $0x98] sm:$0xff]  ;;  %v234_v8 = vld [vmem:[%s778_s9 + $0x30] sm:$0xff] }
   0xf   : > { %354 = vmatpush.msra.mxu0 %v256_v1  ;;  %686 = vmatpush.msra.mxu1 %v256_v1  ;;  %v228_v7 = vld [vmem:[%s778_s9] sm:$0xff]  ;;  %v241_v9 = vld [vmem:[%s778_s9 + $0x68] sm:$0xff]  ;;  %v235_v12 = vld [vmem:[%s778_s9 + $0x38] sm:$0xff] }
  0x10   : > { %690 = vmatpush.msra.mxu2 %v255_v2  ;;  %691 = vmatpush.msra.mxu3 %v255_v2  ;;  %v248_v10 = vld [vmem:[%s778_s9 + $0xa0] sm:$0xff]  ;;  %v229_v11 = vld [vmem:[%s778_s9 + $0x8] sm:$0xff]  ;;  %v242_v13 = vld [vmem:[%s778_s9 + $0x70] sm:$0xff] }
  0x11   : > { %355 = vmatpush.msra.mxu0 %v255_v2  ;;  %689 = vmatpush.msra.mxu1 %v255_v2  ;;  %v249_v14 = vld [vmem:[%s778_s9 + $0xa8] sm:$0xff]  ;;  %v230_v15 = vld [vmem:[%s778_s9 + $0x10] sm:$0xff]  ;;  %v236_v16 = vld [vmem:[%s778_s9 + $0x40] sm:$0xff] }
  0x12   : > { %693 = vmatpush.msra.mxu2 %v254_v3  ;;  %694 = vmatpush.msra.mxu3 %v254_v3  ;;  %v243_v17 = vld [vmem:[%s778_s9 + $0x78] sm:$0xff]  ;;  %v250_v18 = vld [vmem:[%s778_s9 + $0xb0] sm:$0xff]  ;;  %v237_v20 = vld [vmem:[%s778_s9 + $0x48] sm:$0xff] }
  0x13   : > { %356 = vmatpush.msra.mxu0 %v254_v3  ;;  %692 = vmatpush.msra.mxu1 %v254_v3  ;;  %v231_v19 = vld [vmem:[%s778_s9 + $0x18] sm:$0xff]  ;;  %v244_v21 = vld [vmem:[%s778_s9 + $0x80] sm:$0xff]  ;;  %v238_v24 = vld [vmem:[%s778_s9 + $0x50] sm:$0xff] }
  0x14   : > { %696 = vmatpush.msra.mxu2 %v253_v4  ;;  %697 = vmatpush.msra.mxu3 %v253_v4  ;;  %v251_v22 = vld [vmem:[%s778_s9 + $0xb8] sm:$0xff]  ;;  %v232_v23 = vld [vmem:[%s778_s9 + $0x20] sm:$0xff]  ;;  %v245_v25 = vld [vmem:[%s778_s9 + $0x88] sm:$0xff] }
  0x15   : > { %668 = vmatmul.msk.f32.vlgmr.msra.gmra.mxu2 %vm262_vm1, %v240_v5  ;;  %675 = vmatmul.msk.f32.vlgmr.msra.gmra.mxu3 %vm262_vm1, %v247_v6  ;;  %v252_v26 = vld [vmem:[%s778_s9 + $0xc0] sm:$0xff]  ;;  %v233_v27 = vld [vmem:[%s778_s9 + $0x28] sm:$0xff]  ;;  %v239_v28 = vld [vmem:[%s778_s9 + $0x58] sm:$0xff] }
  0x16   : > { %357 = vmatpush.msra.mxu0 %v253_v4  ;;  %695 = vmatpush.msra.mxu1 %v253_v4  ;;  %v246_v29 = vld [vmem:[%s778_s9 + $0x90] sm:$0xff]  ;;  %v840_v38 = vld [vmem:[%s958_s3] ss:$0 sm:$0xff] }
  0x17   : > { %656 = vmatmul.msk.f32.vlgmr.msra.gmra.mxu0 %vm262_vm1, %v228_v7  ;;  %662 = vmatmul.msk.f32.vlgmr.msra.gmra.mxu1 %vm262_vm1, %v234_v8  ;;  %v847_v44 = vld [vmem:[%s959_s4] ss:$0 sm:$0xff] }
  0x1d   : > { %669 = vmatmul.msk.f32.gmra.mxu2 %vm262_vm1, %v241_v9  ;;  %676 = vmatmul.msk.f32.gmra.mxu3 %vm262_vm1, %v248_v10 }
  0x1f   : > { %657 = vmatmul.msk.f32.gmra.mxu0 %vm262_vm1, %v229_v11  ;;  %663 = vmatmul.msk.f32.gmra.mxu1 %vm262_vm1, %v235_v12 }
  0x25   : > { %670 = vmatmul.msk.f32.gmra.mxu2 %vm262_vm1, %v242_v13  ;;  %677 = vmatmul.msk.f32.gmra.mxu3 %vm262_vm1, %v249_v14 }
  0x27   : > { %658 = vmatmul.msk.f32.gmra.mxu0 %vm262_vm1, %v230_v15  ;;  %664 = vmatmul.msk.f32.gmra.mxu1 %vm262_vm1, %v236_v16 }
  0x2d   : > { %671 = vmatmul.msk.f32.gmra.mxu2 %vm262_vm1, %v243_v17  ;;  %678 = vmatmul.msk.f32.gmra.mxu3 %vm262_vm1, %v250_v18 }
  0x2f   : > { %659 = vmatmul.msk.f32.gmra.mxu0 %vm262_vm1, %v231_v19  ;;  %665 = vmatmul.msk.f32.gmra.mxu1 %vm262_vm1, %v237_v20 }
  0x35   : > { %672 = vmatmul.msk.f32.gmra.mxu2 %vm262_vm1, %v244_v21  ;;  %679 = vmatmul.msk.f32.gmra.mxu3 %vm262_vm1, %v251_v22 }
  0x37   : > { %660 = vmatmul.msk.f32.gmra.mxu0 %vm262_vm1, %v232_v23  ;;  %666 = vmatmul.msk.f32.gmra.mxu1 %vm262_vm1, %v238_v24 }
  0x3d   : > { %673 = vmatmul.msk.f32.gmra.mxu2 %vm262_vm1, %v245_v25  ;;  %680 = vmatmul.msk.f32.gmra.mxu3 %vm262_vm1, %v252_v26 }
  0x3f   : > { %661 = vmatmul.msk.f32.gmra.mxu0 %vm262_vm1, %v233_v27  ;;  %667 = vmatmul.msk.f32.gmra.mxu1 %vm262_vm1, %v239_v28 }
  0x45   : > { %674 = vmatmul.msk.f32.gmra.mxu2 %vm262_vm1, %v246_v29 }
  0x94   : > { %v359_v31 = vpop.f32.mrf.mxu0  ;;  %v377_v32 = vpop.f32.mrf.mxu1 }
  0x95   : > { %v360_v33 = vadd.f32 %v833_v30, %v359_v31  ;;  %v378_v34 = vadd.f32 %v833_v30, %v377_v32 }
  0x97   : > { %vm434_vm2 = vcmp.gt.f32.partialorder %v360_v33, 0.0  ;;  %v459_v35 = vmul.f32 0.01, %v360_v33  ;;  %vm440_vm3 = vcmp.gt.f32.partialorder %v378_v34, 0.0  ;;  %v465_v36 = vmul.f32 0.01, %v378_v34 }
  0x98   : > { %v395_v37 = vpop.f32.mrf.mxu2  ;;  %v416_v39 = vpop.f32.mrf.mxu3 }
  0x99   : > { %v396_v40 = vadd.f32 %v833_v30, %v395_v37  ;;  %v484_v41 = vsel %vm434_vm2, %v360_v33, %v459_v35  ;;  %v490_v42 = vsel %vm440_vm3, %v378_v34, %v465_v36  ;;  %v417_v43 = vadd.f32 %v833_v30, %v416_v39 }
  0x9a   : > { %v513_v45 = vmul.f32 %v840_v38, %v484_v41  ;;  %v519_v46 = vmul.f32 %v840_v38, %v490_v42 }
  0x9b   : > { %vm446_vm4 = vcmp.gt.f32.partialorder %v396_v40, 0.0  ;;  %v471_v47 = vmul.f32 0.01, %v396_v40  ;;  %vm453_vm5 = vcmp.gt.f32.partialorder %v417_v43, 0.0  ;;  %v478_v48 = vmul.f32 0.01, %v417_v43 }
  0x9c   : > { %v542_v49 = vadd.f32 %v847_v44, %v513_v45  ;;  %v548_v50 = vadd.f32 %v847_v44, %v519_v46  ;;  %v362_v51 = vpop.f32.mrf.mxu0  ;;  %v380_v52 = vpop.f32.mrf.mxu1 }
  0x9d   : > { %v496_v53 = vsel %vm446_vm4, %v396_v40, %v471_v47  ;;  %v503_v54 = vsel %vm453_vm5, %v417_v43, %v478_v48  ;;  %v363_v55 = vadd.f32 %v833_v30, %v362_v51  ;;  %v381_v56 = vadd.f32 %v833_v30, %v380_v52 }
  0x9e   : > { %v525_v57 = vmul.f32 %v840_v38, %v496_v53  ;;  %567 = vst [vmem:[%s858_s19] sm:$0xff] %v542_v49  ;;  %v532_v58 = vmul.f32 %v840_v38, %v503_v54 }
  0x9f   : > { %573 = vst [vmem:[%s858_s19 + $0x30] sm:$0xff] %v548_v50  ;;  %vm435_vm6 = vcmp.gt.f32.partialorder %v363_v55, 0.0  ;;  %v460_v59 = vmul.f32 0.01, %v363_v55  ;;  %vm441_vm7 = vcmp.gt.f32.partialorder %v381_v56, 0.0 }
  0xa0   : > { %v554_v60 = vadd.f32 %v847_v44, %v525_v57  ;;  %v561_v61 = vadd.f32 %v847_v44, %v532_v58  ;;  %v398_v62 = vpop.f32.mrf.mxu2  ;;  %v466_v63 = vmul.f32 0.01, %v381_v56  ;;  %v419_v0 = vpop.f32.mrf.mxu3 }
  0xa1   : > { %v399_v1 = vadd.f32 %v833_v30, %v398_v62  ;;  %v485_v2 = vsel %vm435_vm6, %v363_v55, %v460_v59  ;;  %v420_v3 = vadd.f32 %v833_v30, %v419_v0 }
  0xa2   : > { %579 = vst [vmem:[%s858_s19 + $0x60] sm:$0xff] %v554_v60  ;;  %v514_v4 = vmul.f32 %v840_v38, %v485_v2  ;;  %v491_v5 = vsel %vm441_vm7, %v381_v56, %v466_v63 }
  0xa3   : > { %586 = vst [vmem:[%s858_s19 + $0x98] sm:$0xff] %v561_v61  ;;  %vm447_vm8 = vcmp.gt.f32.partialorder %v399_v1, 0.0  ;;  %v472_v6 = vmul.f32 0.01, %v399_v1  ;;  %v520_v7 = vmul.f32 %v840_v38, %v491_v5  ;;  %vm454_vm9 = vcmp.gt.f32.partialorder %v420_v3, 0.0 }
  0xa4   : > { %v543_v8 = vadd.f32 %v847_v44, %v514_v4  ;;  %v479_v9 = vmul.f32 0.01, %v420_v3  ;;  %v365_v10 = vpop.f32.mrf.mxu0  ;;  %v383_v11 = vpop.f32.mrf.mxu1 }
  0xa5   : > { %v497_v12 = vsel %vm447_vm8, %v399_v1, %v472_v6  ;;  %v549_v13 = vadd.f32 %v847_v44, %v520_v7  ;;  %v366_v14 = vadd.f32 %v833_v30, %v365_v10  ;;  %v384_v15 = vadd.f32 %v833_v30, %v383_v11 }
  0xa6   : > { %v526_v16 = vmul.f32 %v840_v38, %v497_v12  ;;  %568 = vst [vmem:[%s858_s19 + $0x8] sm:$0xff] %v543_v8  ;;  %v504_v17 = vsel %vm454_vm9, %v420_v3, %v479_v9 }
  0xa7   : > { %574 = vst [vmem:[%s858_s19 + $0x38] sm:$0xff] %v549_v13  ;;  %v533_v18 = vmul.f32 %v840_v38, %v504_v17  ;;  %vm436_vm10 = vcmp.gt.f32.partialorder %v366_v14, 0.0  ;;  %v461_v19 = vmul.f32 0.01, %v366_v14  ;;  %vm442_vm11 = vcmp.gt.f32.partialorder %v384_v15, 0.0 }
  0xa8   : > { %v555_v20 = vadd.f32 %v847_v44, %v526_v16  ;;  %v401_v21 = vpop.f32.mrf.mxu2  ;;  %v467_v22 = vmul.f32 0.01, %v384_v15  ;;  %v422_v23 = vpop.f32.mrf.mxu3 }
  0xa9   : > { %v562_v24 = vadd.f32 %v847_v44, %v533_v18  ;;  %v402_v25 = vadd.f32 %v833_v30, %v401_v21  ;;  %v486_v26 = vsel %vm436_vm10, %v366_v14, %v461_v19  ;;  %v423_v27 = vadd.f32 %v833_v30, %v422_v23 }
  0xaa   : > { %580 = vst [vmem:[%s858_s19 + $0x68] sm:$0xff] %v555_v20  ;;  %v515_v28 = vmul.f32 %v840_v38, %v486_v26  ;;  %v492_v29 = vsel %vm442_vm11, %v384_v15, %v467_v22 }
  0xab   : > { %587 = vst [vmem:[%s858_s19 + $0xa0] sm:$0xff] %v562_v24  ;;  %vm448_vm12 = vcmp.gt.f32.partialorder %v402_v25, 0.0  ;;  %v473_v31 = vmul.f32 0.01, %v402_v25  ;;  %v521_v32 = vmul.f32 %v840_v38, %v492_v29  ;;  %vm455_vm13 = vcmp.gt.f32.partialorder %v423_v27, 0.0 }
  0xac   : > { %v544_v33 = vadd.f32 %v847_v44, %v515_v28  ;;  %v480_v34 = vmul.f32 0.01, %v423_v27  ;;  %v368_v35 = vpop.f32.mrf.mxu0  ;;  %v386_v36 = vpop.f32.mrf.mxu1 }
  0xad   : > { %v498_v37 = vsel %vm448_vm12, %v402_v25, %v473_v31  ;;  %v550_v39 = vadd.f32 %v847_v44, %v521_v32  ;;  %v369_v40 = vadd.f32 %v833_v30, %v368_v35  ;;  %v387_v41 = vadd.f32 %v833_v30, %v386_v36 }
  0xae   : > { %v527_v42 = vmul.f32 %v840_v38, %v498_v37  ;;  %569 = vst [vmem:[%s858_s19 + $0x10] sm:$0xff] %v544_v33  ;;  %v505_v43 = vsel %vm455_vm13, %v423_v27, %v480_v34 }
  0xaf   : > { %575 = vst [vmem:[%s858_s19 + $0x40] sm:$0xff] %v550_v39  ;;  %v534_v45 = vmul.f32 %v840_v38, %v505_v43  ;;  %vm437_vm14 = vcmp.gt.f32.partialorder %v369_v40, 0.0  ;;  %v462_v46 = vmul.f32 0.01, %v369_v40  ;;  %vm443_vm15 = vcmp.gt.f32.partialorder %v387_v41, 0.0 }
  0xb0   : > { %v556_v47 = vadd.f32 %v847_v44, %v527_v42  ;;  %v404_v48 = vpop.f32.mrf.mxu2  ;;  %v468_v49 = vmul.f32 0.01, %v387_v41  ;;  %v425_v50 = vpop.f32.mrf.mxu3 }
  0xb1   : > { %v563_v51 = vadd.f32 %v847_v44, %v534_v45  ;;  %v405_v52 = vadd.f32 %v833_v30, %v404_v48  ;;  %v487_v53 = vsel %vm437_vm14, %v369_v40, %v462_v46  ;;  %v426_v54 = vadd.f32 %v833_v30, %v425_v50 }
  0xb2   : > { %581 = vst [vmem:[%s858_s19 + $0x70] sm:$0xff] %v556_v47  ;;  %v516_v55 = vmul.f32 %v840_v38, %v487_v53  ;;  %v493_v56 = vsel %vm443_vm15, %v387_v41, %v468_v49 }
  0xb3   : > { %588 = vst [vmem:[%s858_s19 + $0xa8] sm:$0xff] %v563_v51  ;;  %vm449_vm0 = vcmp.gt.f32.partialorder %v405_v52, 0.0  ;;  %v474_v57 = vmul.f32 0.01, %v405_v52  ;;  %v522_v58 = vmul.f32 %v840_v38, %v493_v56  ;;  %vm456_vm1 = vcmp.gt.f32.partialorder %v426_v54, 0.0 }
  0xb4   : > { %v545_v59 = vadd.f32 %v847_v44, %v516_v55  ;;  %v481_v60 = vmul.f32 0.01, %v426_v54  ;;  %v371_v61 = vpop.f32.mrf.mxu0  ;;  %v389_v62 = vpop.f32.mrf.mxu1 }
  0xb5   : > { %v499_v63 = vsel %vm449_vm0, %v405_v52, %v474_v57  ;;  %v551_v0 = vadd.f32 %v847_v44, %v522_v58  ;;  %v372_v1 = vadd.f32 %v833_v30, %v371_v61  ;;  %v390_v2 = vadd.f32 %v833_v30, %v389_v62 }
  0xb6   : > { %v528_v3 = vmul.f32 %v840_v38, %v499_v63  ;;  %570 = vst [vmem:[%s858_s19 + $0x18] sm:$0xff] %v545_v59  ;;  %v506_v4 = vsel %vm456_vm1, %v426_v54, %v481_v60 }
  0xb7   : > { %576 = vst [vmem:[%s858_s19 + $0x48] sm:$0xff] %v551_v0  ;;  %v535_v5 = vmul.f32 %v840_v38, %v506_v4  ;;  %vm438_vm2 = vcmp.gt.f32.partialorder %v372_v1, 0.0  ;;  %v463_v6 = vmul.f32 0.01, %v372_v1  ;;  %vm444_vm3 = vcmp.gt.f32.partialorder %v390_v2, 0.0 }
  0xb8   : > { %v557_v7 = vadd.f32 %v847_v44, %v528_v3  ;;  %v407_v8 = vpop.f32.mrf.mxu2  ;;  %v469_v9 = vmul.f32 0.01, %v390_v2  ;;  %v428_v10 = vpop.f32.mrf.mxu3 }
  0xb9   : > { %v564_v11 = vadd.f32 %v847_v44, %v535_v5  ;;  %v408_v12 = vadd.f32 %v833_v30, %v407_v8  ;;  %v488_v13 = vsel %vm438_vm2, %v372_v1, %v463_v6  ;;  %v429_v14 = vadd.f32 %v833_v30, %v428_v10 }
  0xba   : > { %582 = vst [vmem:[%s858_s19 + $0x78] sm:$0xff] %v557_v7  ;;  %v517_v15 = vmul.f32 %v840_v38, %v488_v13  ;;  %v494_v16 = vsel %vm444_vm3, %v390_v2, %v469_v9 }
  0xbb   : > { %589 = vst [vmem:[%s858_s19 + $0xb0] sm:$0xff] %v564_v11  ;;  %vm450_vm4 = vcmp.gt.f32.partialorder %v408_v12, 0.0  ;;  %v475_v17 = vmul.f32 0.01, %v408_v12  ;;  %v523_v18 = vmul.f32 %v840_v38, %v494_v16  ;;  %vm457_vm5 = vcmp.gt.f32.partialorder %v429_v14, 0.0 }
  0xbc   : > { %v546_v19 = vadd.f32 %v847_v44, %v517_v15  ;;  %v482_v20 = vmul.f32 0.01, %v429_v14  ;;  %v374_v21 = vpop.f32.mrf.mxu0  ;;  %v392_v22 = vpop.f32.mrf.mxu1 }
  0xbd   : > { %v500_v23 = vsel %vm450_vm4, %v408_v12, %v475_v17  ;;  %v552_v24 = vadd.f32 %v847_v44, %v523_v18  ;;  %v375_v25 = vadd.f32 %v833_v30, %v374_v21  ;;  %v393_v26 = vadd.f32 %v833_v30, %v392_v22 }
  0xbe   : > { %v529_v27 = vmul.f32 %v840_v38, %v500_v23  ;;  %571 = vst [vmem:[%s858_s19 + $0x20] sm:$0xff] %v546_v19  ;;  %v507_v28 = vsel %vm457_vm5, %v429_v14, %v482_v20 }
  0xbf   : > { %577 = vst [vmem:[%s858_s19 + $0x50] sm:$0xff] %v552_v24  ;;  %v536_v29 = vmul.f32 %v840_v38, %v507_v28  ;;  %vm439_vm6 = vcmp.gt.f32.partialorder %v375_v25, 0.0  ;;  %v464_v31 = vmul.f32 0.01, %v375_v25  ;;  %vm445_vm7 = vcmp.gt.f32.partialorder %v393_v26, 0.0 }
  0xc0   : > { %v558_v32 = vadd.f32 %v847_v44, %v529_v27  ;;  %v410_v33 = vpop.f32.mrf.mxu2  ;;  %v470_v34 = vmul.f32 0.01, %v393_v26  ;;  %v431_v35 = vpop.f32.mrf.mxu3 }
  0xc1   : > { %v565_v36 = vadd.f32 %v847_v44, %v536_v29  ;;  %v411_v37 = vadd.f32 %v833_v30, %v410_v33  ;;  %v489_v39 = vsel %vm439_vm6, %v375_v25, %v464_v31  ;;  %v432_v40 = vadd.f32 %v833_v30, %v431_v35 }
  0xc2   : > { %583 = vst [vmem:[%s858_s19 + $0x80] sm:$0xff] %v558_v32  ;;  %v518_v41 = vmul.f32 %v840_v38, %v489_v39  ;;  %v495_v42 = vsel %vm445_vm7, %v393_v26, %v470_v34 }
  0xc3   : > { %590 = vst [vmem:[%s858_s19 + $0xb8] sm:$0xff] %v565_v36  ;;  %vm451_vm8 = vcmp.gt.f32.partialorder %v411_v37, 0.0  ;;  %v476_v43 = vmul.f32 0.01, %v411_v37  ;;  %v524_v45 = vmul.f32 %v840_v38, %v495_v42  ;;  %vm458_vm9 = vcmp.gt.f32.partialorder %v432_v40, 0.0 }
  0xc4   : > { %v547_v46 = vadd.f32 %v847_v44, %v518_v41  ;;  %v483_v47 = vmul.f32 0.01, %v432_v40 }
  0xc5   : > { %v501_v48 = vsel %vm451_vm8, %v411_v37, %v476_v43  ;;  %v553_v49 = vadd.f32 %v847_v44, %v524_v45 }
  0xc6   : > { %v530_v50 = vmul.f32 %v840_v38, %v501_v48  ;;  %572 = vst [vmem:[%s858_s19 + $0x28] sm:$0xff] %v547_v46  ;;  %v508_v51 = vsel %vm458_vm9, %v432_v40, %v483_v47 }
  0xc7   : > { %578 = vst [vmem:[%s858_s19 + $0x58] sm:$0xff] %v553_v49  ;;  %v537_v52 = vmul.f32 %v840_v38, %v508_v51 }
  0xc8   : > { %v559_v53 = vadd.f32 %v847_v44, %v530_v50  ;;  %v413_v54 = vpop.f32.mrf.mxu2 }
  0xc9   : > { %v566_v55 = vadd.f32 %v847_v44, %v537_v52  ;;  %v414_v56 = vadd.f32 %v833_v30, %v413_v54 }
  0xca   : > { %584 = vst [vmem:[%s858_s19 + $0x88] sm:$0xff] %v559_v53 }
  0xcb   : > { %591 = vst [vmem:[%s858_s19 + $0xc0] sm:$0xff] %v566_v55  ;;  %vm452_vm10 = vcmp.gt.f32.partialorder %v414_v56, 0.0  ;;  %v477_v57 = vmul.f32 0.01, %v414_v56 }
  0xcd   : > { %v502_v58 = vsel %vm452_vm10, %v414_v56, %v477_v57 }
  0xce   : > { %v531_v59 = vmul.f32 %v840_v38, %v502_v58 }
  0xd0   : > { %v560_v60 = vadd.f32 %v847_v44, %v531_v59 }
  0xd2   : > { %585 = vst [vmem:[%s858_s19 + $0x90] sm:$0xff] %v560_v60 }
  0xd3 PF: > { %s15_s18 = sadd.s32 1, %s715_s18  }
  0xd4   : > { %p12_p4 = scmp.ge.s32.totalorder %s15_s18, 4  }
  0xd6   :  { %14 = sbr.rel (!%p12_p4) target bundleno = 1 (0x1), region = 70 }

</bundles_post_ra>
